<compile_context>
chip_gen: v5e
topology: v5e:2x2
jax: 0.10.0
libtpu: 0.0.40
codegen_flags: <defaults>
</compile_context>

<pallas_src>
import functools

import jax
import jax.numpy as jnp
from jax.experimental import pallas as pl
from jax.experimental.pallas import tpu as pltpu


_LANE = 128    # vreg lane width (last dim)
_SUBLANE = 8   # f32 sublane width (second-to-last dim)


def _round_up(n, m):
    return ((n + m - 1) // m) * m


# ---------------------------------------------------------------------------
# One-time parameter packing (hoisted out of the per-call path).
# ---------------------------------------------------------------------------
def pack_ensemble_params(w1, b1, w2, b2, *, compute_dtype=jnp.bfloat16):
    """Pack per-member weights for the fused ensemble kernel.

    w1: [M, D, H]  b1: [M, 1, H]  w2: [M, H, C]  b2: [M, 1, C]
    Returns a dict of packed arrays; call this ONCE and reuse across forwards.
    """
    M, D, H = w1.shape
    C = w2.shape[-1]
    MH = M * H
    MH_p = _round_up(MH, _LANE)          # packed hidden width (lane multiple)
    inv_m = 1.0 / M                      # ensemble mean, folded into layer 2

    # W1: (M, D, H) -> (D, M*H) member-major columns, zero-pad hidden columns.
    w1_pk = jnp.transpose(w1, (1, 0, 2)).reshape(D, MH)
    w1_pk = jnp.pad(w1_pk, ((0, 0), (0, MH_p - MH))).astype(compute_dtype)
    # b1: (M, 1, H) -> (1, M*H); padded hidden columns stay 0 through ReLU.
    b1_pk = jnp.pad(b1.reshape(1, MH), ((0, 0), (0, MH_p - MH)))
    b1_pk = b1_pk.astype(jnp.float32)
    # W2: (M, H, C) -> (M*H, C) member-major rows; 1/M folded; zero-pad rows.
    w2_pk = jnp.pad(w2.reshape(MH, C) * inv_m, ((0, MH_p - MH), (0, 0)))
    w2_pk = w2_pk.astype(compute_dtype)
    # b2: mean over members (1/M folded), kept at its true width C.
    b2_pk = jnp.mean(b2, axis=0).reshape(1, C).astype(jnp.float32)

    return {"w1": w1_pk, "b1": b1_pk, "w2": w2_pk, "b2": b2_pk,
            "compute_dtype": jnp.dtype(compute_dtype)}


# ---------------------------------------------------------------------------
# Kernel: whole ensemble = two MXU matmuls (+ bias / ReLU epilogue).
# ---------------------------------------------------------------------------
def _ensemble_kernel(x_ref, w1_ref, b1_ref, w2_ref, b2_ref, o_ref, *,
                     compute_dtype):
    # Cast the x tile in-kernel (VPU work that hides under matmul/DMA) instead
    # of an extra wrapper-side HBM pass over x.
    x = x_ref[...].astype(compute_dtype)
    # Layer 1, all members fused: (Bt, D) @ (D, MH_p) -> f32 accumulate.
    h = jnp.dot(x, w1_ref[...], preferred_element_type=jnp.float32)
    h = jnp.maximum(h + b1_ref[...], 0.0)
    # Layer 2 + member-sum + 1/M (pre-folded): (Bt, MH_p) @ (MH_p, C) -> f32.
    p = jnp.dot(h.astype(compute_dtype), w2_ref[...],
                preferred_element_type=jnp.float32)
    o_ref[...] = (p + b2_ref[...]).astype(o_ref.dtype)


# ---------------------------------------------------------------------------
# Forward wrappers.
# ---------------------------------------------------------------------------
def ensemble_forward_packed(x, packed, *, max_block_b=1024):
    """Fused ensemble forward: x [B, D] -> [B, C] using pre-packed params."""
    w1_pk, b1_pk = packed["w1"], packed["b1"]
    w2_pk, b2_pk = packed["w2"], packed["b2"]
    compute_dtype = packed["compute_dtype"]
    D, MH_p = w1_pk.shape
    C = w2_pk.shape[-1]
    B = x.shape[0]
    out_dtype = x.dtype

    kernel = functools.partial(_ensemble_kernel, compute_dtype=compute_dtype)

    # bf16 packs two rows per sublane -> keep row-block counts 16-aligned.
    align = 16 if compute_dtype.itemsize < 4 else _SUBLANE

    if B <= max_block_b:
        # Single invocation, no grid, no batch padding: one set of DMAs and
        # zero per-grid-step overhead.  (On v6e's 128 MiB VMEM the biggest
        # tile that fits is optimal; these operands are far below any limit.)
        return pl.pallas_call(
            kernel,
            out_shape=jax.ShapeDtypeStruct((B, C), out_dtype),
        )(x, w1_pk, b1_pk, w2_pk, b2_pk)

    # Large batch: tile B as a parallel grid axis (>= 2 steps by construction,
    # so both v7x TensorCores get work).  block_b is derived from B so an
    # awkward B does not pad a whole extra block.
    n_steps = int(pl.cdiv(B, max_block_b))
    block_b = _round_up(int(pl.cdiv(B, n_steps)), align)
    B_p = block_b * n_steps
    x_p = jnp.pad(x, ((0, B_p - B), (0, 0))) if B_p != B else x

    # VMEM budget: resident weights (single-buffered) + double-buffered x/out
    # tiles; only raise the scoped limit when actually needed (v7x: 64 MiB
    # physical, ~32 MiB default scoped limit).
    resident = (w1_pk.size * w1_pk.dtype.itemsize
                + w2_pk.size * w2_pk.dtype.itemsize
                + (b1_pk.size + b2_pk.size) * 4)
    streamed = 2 * block_b * (D * x.dtype.itemsize
                              + C * jnp.dtype(out_dtype).itemsize)
    vmem_need = 2 * resident + streamed + (2 << 20)
    cp_kwargs = dict(dimension_semantics=("parallel",))
    if vmem_need > (32 << 20):
        cp_kwargs["vmem_limit_bytes"] = int(vmem_need)

    def call(single_buffer_weights):
        def w_spec(shape):
            # Constant block index -> grid-invariant array; single-buffering
            # halves its resident VMEM footprint at zero extra DMA cost.
            if single_buffer_weights and hasattr(pl, "Buffered"):
                return pl.BlockSpec(shape, lambda i: (0, 0),
                                    pipeline_mode=pl.Buffered(1))
            return pl.BlockSpec(shape, lambda i: (0, 0))

        return pl.pallas_call(
            kernel,
            out_shape=jax.ShapeDtypeStruct((B_p, C), out_dtype),
            grid_spec=pltpu.PrefetchScalarGridSpec(
                num_scalar_prefetch=0,
                grid=(n_steps,),
                in_specs=[
                    pl.BlockSpec((block_b, D), lambda i: (i, 0)),   # x tile
                    w_spec((D, MH_p)),                              # packed W1
                    w_spec((1, MH_p)),                              # packed b1
                    w_spec((MH_p, C)),                              # packed W2/M
                    w_spec((1, C)),                                 # mean(b2)
                ],
                out_specs=pl.BlockSpec((block_b, C), lambda i: (i, 0)),
            ),
            compiler_params=pltpu.CompilerParams(**cp_kwargs),
        )(x_p, w1_pk, b1_pk, w2_pk, b2_pk)

    try:
        out = call(single_buffer_weights=True)
    except Exception:
        # pl.Buffered(1) not supported by this jax build: fall back to the
        # default double-buffered (still correct) pipeline.
        out = call(single_buffer_weights=False)

    return out[:B] if B_p != B else out


def ensemble_forward(x, w1, b1, w2, b2, *, compute_dtype=jnp.bfloat16,
                     max_block_b=1024):
    """One-off convenience wrapper (pre-pack with pack_ensemble_params for
    repeated inference to avoid per-call weight-packing HBM passes)."""
    packed = pack_ensemble_params(w1, b1, w2, b2, compute_dtype=compute_dtype)
    return ensemble_forward_packed(x, packed, max_block_b=max_block_b)


def ensemble_reference(x, w1, b1, w2, b2):
    """Pure-JAX reference matching the PyTorch semantics exactly."""
    preds = []
    for m in range(w1.shape[0]):
        h = jnp.maximum(x @ w1[m] + b1[m], 0.0)
        preds.append(h @ w2[m] + b2[m])
    return jnp.mean(jnp.stack(preds), axis=0)


if __name__ == "__main__":
    # Small, deterministic setup.
    M, B, D, H, C = 3, 8, 32, 16, 8
    key = jax.random.PRNGKey(0)
    kx, k1, k2, k3, k4 = jax.random.split(key, 5)

    x = jax.random.normal(kx, (B, D), dtype=jnp.float32)
    w1 = jax.random.normal(k1, (M, D, H), dtype=jnp.float32) * 0.1
    b1 = jax.random.normal(k2, (M, 1, H), dtype=jnp.float32) * 0.1
    w2 = jax.random.normal(k3, (M, H, C), dtype=jnp.float32) * 0.1
    b2 = jax.random.normal(k4, (M, 1, C), dtype=jnp.float32) * 0.1

    ref = ensemble_reference(x, w1, b1, w2, b2)

    # 1) Default bf16-fed MXU path (f32 accumulation), packed once, no grid.
    packed_bf16 = pack_ensemble_params(w1, b1, w2, b2)          # bf16 default
    out = ensemble_forward_packed(x, packed_bf16)
    jax.block_until_ready(out)
    assert out.shape == (B, C)
    assert jnp.allclose(out, ref, atol=5e-2, rtol=5e-2)

    # 2) Opt-in f32 compute: tight agreement with the reference.
    packed_f32 = pack_ensemble_params(w1, b1, w2, b2, compute_dtype=jnp.float32)
    out_f32 = ensemble_forward_packed(x, packed_f32)
    jax.block_until_ready(out_f32)
    assert jnp.allclose(out_f32, ref, atol=2e-5, rtol=1e-5)

    # 3) Larger batch with a forced small block: exercises the parallel batch
    #    grid (2 steps) + resident single-buffered weights, reusing the same
    #    pre-packed params (pack once, call many).
    B2 = 512
    x2 = jax.random.normal(kx, (B2, D), dtype=jnp.float32)
    ref2 = ensemble_reference(x2, w1, b1, w2, b2)
    out2 = ensemble_forward_packed(x2, packed_bf16, max_block_b=256)
    jax.block_until_ready(out2)
    assert out2.shape == (B2, C)
    assert jnp.allclose(out2, ref2, atol=5e-2, rtol=5e-2)

    out2_f32 = ensemble_forward_packed(x2, packed_f32, max_block_b=256)
    jax.block_until_ready(out2_f32)
    assert jnp.allclose(out2_f32, ref2, atol=1e-4, rtol=1e-4)

    print("KERNEL_OK")
</pallas_src>

<mosaic_0001>
module attributes {stable_mosaic.version = 11 : i64} {
  func.func @_ensemble_kernel(%arg0: memref<8x32xf32, #tpu.memory_space<vmem>>, %arg1: memref<32x128xbf16, #tpu.memory_space<vmem>>, %arg2: memref<1x128xf32, #tpu.memory_space<vmem>>, %arg3: memref<128x8xbf16, #tpu.memory_space<vmem>>, %arg4: memref<1x8xf32, #tpu.memory_space<vmem>>, %arg5: memref<8x8xf32, #tpu.memory_space<vmem>>) attributes {dimension_semantics = [], scalar_prefetch = 0 : i64, scratch_operands = 0 : i64, tpu.core_type = #tpu.core_type<tc>} {
    %c0 = arith.constant 0 : index
    %c0_0 = arith.constant 0 : index
    %0 = vector.load %arg0[%c0, %c0_0] : memref<8x32xf32, #tpu.memory_space<vmem>>, vector<8x32xf32>
    %1 = arith.truncf %0 : vector<8x32xf32> to vector<8x32xbf16>
    %c0_1 = arith.constant 0 : index
    %c0_2 = arith.constant 0 : index
    %2 = vector.load %arg1[%c0_1, %c0_2] : memref<32x128xbf16, #tpu.memory_space<vmem>>, vector<32x128xbf16>
    %cst = arith.constant dense<0.000000e+00> : vector<8x128xf32>
    %3 = tpu.matmul %1, %2, %cst {dimension_numbers = #tpu.dot_dimension_numbers<[1], [0], [0], [1], [0, 0, 1, 1], [], []>} : vector<8x32xbf16>, vector<32x128xbf16>, vector<8x128xf32> -> vector<8x128xf32>
    %c0_3 = arith.constant 0 : index
    %c0_4 = arith.constant 0 : index
    %4 = vector.load %arg2[%c0_3, %c0_4] : memref<1x128xf32, #tpu.memory_space<vmem>>, vector<1x128xf32>
    %5 = vector.broadcast %4 : vector<1x128xf32> to vector<8x128xf32>
    %6 = arith.addf %3, %5 : vector<8x128xf32>
    %cst_5 = arith.constant 0.000000e+00 : f32
    %7 = vector.broadcast %cst_5 : f32 to vector<8x128xf32>
    %8 = arith.maximumf %6, %7 : vector<8x128xf32>
    %9 = arith.truncf %8 : vector<8x128xf32> to vector<8x128xbf16>
    %c0_6 = arith.constant 0 : index
    %c0_7 = arith.constant 0 : index
    %10 = vector.load %arg3[%c0_6, %c0_7] : memref<128x8xbf16, #tpu.memory_space<vmem>>, vector<128x8xbf16>
    %cst_8 = arith.constant dense<0.000000e+00> : vector<8x8xf32>
    %11 = tpu.matmul %9, %10, %cst_8 {dimension_numbers = #tpu.dot_dimension_numbers<[1], [0], [0], [1], [0, 0, 1, 1], [], []>} : vector<8x128xbf16>, vector<128x8xbf16>, vector<8x8xf32> -> vector<8x8xf32>
    %c0_9 = arith.constant 0 : index
    %c0_10 = arith.constant 0 : index
    %12 = vector.load %arg4[%c0_9, %c0_10] : memref<1x8xf32, #tpu.memory_space<vmem>>, vector<1x8xf32>
    %13 = vector.broadcast %12 : vector<1x8xf32> to vector<8x8xf32>
    %14 = arith.addf %11, %13 : vector<8x8xf32>
    %c0_11 = arith.constant 0 : index
    %c0_12 = arith.constant 0 : index
    %15 = vector.load %arg5[%c0_11, %c0_12] : memref<8x8xf32, #tpu.memory_space<vmem>>, vector<8x8xf32>
    tpu.vector_store %arg5[%c0_11, %c0_12], %14 {strides = array<i32>} : memref<8x8xf32, #tpu.memory_space<vmem>>, vector<8x8xf32>,
    return
  }
}

</mosaic_0001>

<bundles_post_ra>
// kernel: tpu_custom_call.1
= control target key start
LH: loop header
LB: loop body
LE: loop exit
PB: predicated region body
PF: predicated region fallthrough
CT: control target
= control target key end

     0   :  { %s315_s0 = inlined_call_operand.vmem [shape: f32[8,32], index: 0, kind: input, shape index: {}]   ;;  %s316_s1 = inlined_call_operand.vmem [shape: bf16[32,128], index: 1, kind: input, shape index: {}]   ;;  %s317_s2 = inlined_call_operand.vmem [shape: f32[1,128], index: 2, kind: input, shape index: {}]   ;;  %s318_s3 = inlined_call_operand.vmem [shape: bf16[128,8], index: 3, kind: input, shape index: {}]   ;;  %s319_s4 = inlined_call_operand.vmem [shape: f32[1,8], index: 4, kind: input, shape index: {}]   ;;  %s320_s5 = inlined_call_operand.hbm [shape: f32[8,8], index: 5, kind: output, shape index: {}]  }
   0x1   :  { %v204_v0 = vld [vmem:[%s316_s1 + $0x8] sm:$0xff]  ;;  %v212_v1 = vld [vmem:[%s318_s3 + $0x38] sm:$0xff]  ;;  %v203_v2 = vld [vmem:[%s316_s1] sm:$0xff] }
   0x2   :  { %54 = vmatpush.bf16.msra.mxu0 %v204_v0  ;;  %v22_v3 = vld [vmem:[%s315_s0] sm:$0xff]  ;;  %131 = vmatpush.bf16.msra.mxu1 %v212_v1  ;;  %v211_v4 = vld [vmem:[%s318_s3 + $0x30] sm:$0xff] }
   0x3   :  { %10 = vsyncpa [#allocation3], 0  ;;  %v23_v5 = vpack.c.bf16 %v22_v3, %v22_v3  ;;  %vm44_vm0 = vcmask 261120   ;;  %v210_v6 = vld [vmem:[%s318_s3 + $0x28] sm:$0xff]  ;;  %v209_v7 = vld [vmem:[%s318_s3 + $0x20] sm:$0xff]  ;;  %s242_s17 = smov [#allocation2]  }
   0x4   :  { %v208_v8 = vld [vmem:[%s318_s3 + $0x18] sm:$0xff]  ;;  %v207_v9 = vld [vmem:[%s318_s3 + $0x10] sm:$0xff]  ;;  %v206_v10 = vld [vmem:[%s318_s3 + $0x8] sm:$0xff]  ;;  %s151_s18 = sshll.u32 %s242_s17, 4  ;;  %vm144_vm1 = vcmask 64512   ;;  %s152_s18 = int_to_ptr.vmem [resolvable:$true] %s151_s18 }
   0x5   :  { %v205_v11 = vld [vmem:[%s318_s3] sm:$0xff]  ;;  %s153_s3 = sshll.u32 %s320_s5, 4  ;;  %s154_s3 = int_to_ptr.hbm [resolvable:$true] %s153_s3 }
   0x6   :  { %55 = vmatpush.bf16.msra.mxu0 %v203_v2  ;;  %132 = vmatpush.bf16.msra.mxu1 %v211_v4  ;;  %v214_v12 = vld [vmem:[%s317_s2] ss:$0 sm:$0xff] }
   0x7   :  { %v215_v18 = vld [vmem:[%s319_s4] ss:$0 sm:$0xff] }
   0x9   :  { %170 = vmatmul.msk.bf16.vlgmr.msra.gmra.mxu0 %vm44_vm0, %v23_v5 }
   0xa   :  { %133 = vmatpush.bf16.msra.mxu1 %v210_v6 }
   0xe   :  { %134 = vmatpush.bf16.msra.mxu1 %v209_v7 }
  0x12   :  { %135 = vmatpush.bf16.msra.mxu1 %v208_v8 }
  0x16   :  { %136 = vmatpush.bf16.msra.mxu1 %v207_v9 }
  0x1a   :  { %137 = vmatpush.bf16.msra.mxu1 %v206_v10 }
  0x1e   :  { %138 = vmatpush.bf16.msra.mxu1 %v205_v11 }
  0x86   :  { %v57_v13 = vpop.f32.mrf.mxu0 }
  0x87   :  { %v58_v14 = vadd.f32 %v214_v12, %v57_v13 }
  0x89   :  { %v61_v15 = vmax.f32 %v58_v14, 0.0 }
  0x8b   :  { %v62_v16 = vpack.c.bf16 %v61_v15, %v61_v15 }
  0x8d   :  { %139 = vmatmul.bf16.vlgmr.msra.gmra.mxu1 %v62_v16 }
  0x8e   :  { %v59_v17 = vpop.f32.mrf.mxu0 }
 0x10a   :  { %v140_v19 = vpop.f32.mrf.mxu1 }
 0x10b   :  { %v141_v20 = vadd.f32 %v215_v18, %v140_v19 }
 0x10d   :  { %145 = vst.msk [vmem:[#allocation2] sm:$0xff] %vm144_vm1, %v141_v20 }
 0x10e   :  { %156 = dma.vmem_to_hbm [thread:$0]  %s152_s18, 128, %s154_s3, [#allocation3]  }
 0x112   :  { %v142_v21 = vpop.f32.mrf.mxu1 }
 0x113   :  { %240 = dma.done.wait [#allocation3], 128  }
 0x114   :  { %241 = vsyncadd [#allocation3], 4294967168 }
 0x115   :  { %161 = vsyncpa [#allocation3], 1 }

</bundles_post_ra>
